<compile_context>
chip_gen: v6e
topology: v6e:2x2x1
jax: 0.10.0
libtpu: 0.0.40
codegen_flags: <defaults>
</compile_context>

<pallas_src>
import functools

import jax
import jax.numpy as jnp
from jax.experimental import pallas as pl
from jax.experimental.pallas import tpu as pltpu


def _round_up(x: int, m: int) -> int:
    return (x + m - 1) // m * m


def _sublane_pack(dtype) -> int:
    # Native second-minor packing: 8 rows for 4-byte, 16 for 2-byte, 32 for 1-byte.
    return max(8, 32 // jnp.dtype(dtype).itemsize)


def _vmem_limit_bytes() -> int:
    # Generation-aware: ~96 MiB on 128-MiB parts (v5e/v6e), ~48 MiB on v7x (64 MiB).
    try:
        cap = int(pltpu.get_tpu_info().vmem_capacity_bytes)
    except Exception:
        cap = 64 * 1024 * 1024          # conservative fallback, safe on all gens
    return min((3 * cap) // 4, 96 * 1024 * 1024)


def avg_readout_kernel(mask_ref, emb_ref, out_ref, acc_ref, rs_ref, *, precision):
    """Grid = (M_blocks, N_blocks); grid axis 1 (N) is the reduction axis."""
    k = pl.program_id(1)

    @pl.when(k == 0)
    def _init():
        acc_ref[...] = jnp.zeros_like(acc_ref)
        rs_ref[...] = jnp.zeros_like(rs_ref)

    m_tile = mask_ref[...]
    # MXU: accumulate mask_tile @ emb_tile into the f32 VMEM accumulator.
    acc_ref[...] += jnp.dot(m_tile, emb_ref[...],
                            preferred_element_type=jnp.float32,
                            precision=precision)
    # Row sums ride on the XLU (free slot here) into a (tm, 1) f32 scratch.
    rs_ref[...] += jnp.sum(m_tile.astype(jnp.float32), axis=1, keepdims=True)

    @pl.when(k == pl.num_programs(1) - 1)
    def _finalize():
        # EUP approx reciprocal: its per-row scale error cancels in the L2 normalize.
        inv_rs = pl.reciprocal(rs_ref[...], approx=True)          # (tm, 1)
        g = acc_ref[...] * inv_rs                                 # (tm, D) f32
        # F.normalize(p=2, dim=1): x / max(||x||_2, 1e-12)
        sq = jnp.sum(g * g, axis=1, keepdims=True)
        inv_norm = jnp.where(sq > 1e-24, jax.lax.rsqrt(sq), 1e12)
        out_ref[...] = (g * inv_norm).astype(out_ref.dtype)


def avg_readout(emb, mask, *, tn_cap=2048):
    """emb: [N, D], mask: [M, N] -> [M, D] (result dtype of mask @ emb)."""
    N, D = emb.shape
    M, N2 = mask.shape
    assert N == N2, (emb.shape, mask.shape)

    out_dtype = jnp.result_type(mask.dtype, emb.dtype)
    bpe_mask = jnp.dtype(mask.dtype).itemsize
    bpe_emb = jnp.dtype(emb.dtype).itemsize
    bpe_out = jnp.dtype(out_dtype).itemsize
    pack = max(_sublane_pack(mask.dtype), _sublane_pack(out_dtype))

    vmem_limit = _vmem_limit_bytes()
    budget = vmem_limit - (2 << 20)     # headroom for Mosaic-internal scratch

    def step_bytes(tm_, tn_):
        # double-buffered input tiles + f32 accumulators + double-buffered output
        return (2 * (tm_ * tn_ * bpe_mask + tn_ * D * bpe_emb)
                + tm_ * D * 4 + tm_ * 4 + 2 * tm_ * D * bpe_out)

    # --- choose tm: prefer untiled M (emb read once, no mask/out padding) -----
    if step_bytes(_round_up(M, pack), 128) <= budget:
        tm, m_pad = M, M
    else:
        tm = 256
        while tm > pack and step_bytes(tm, 128) > budget:
            tm //= 2
        tm = max(_round_up(tm, pack), pack)
        m_pad = _round_up(M, tm)

    # --- choose tn: largest multiple of 128 (capped) fitting the VMEM budget --
    tn = min(_round_up(N, 128), max(128, _round_up(tn_cap, 128)))
    while tn > 128 and step_bytes(_round_up(tm, pack), tn) > budget:
        tn -= 128
    if N <= tn:
        tn, n_pad = N, N                 # single reduction step, no padding at all
    else:
        n_pad = _round_up(N, tn)

    # --- pad only the axes that are actually tiled ----------------------------
    mask_in, emb_in = mask, emb
    if n_pad != N:
        mask_in = jnp.pad(mask_in, ((0, 0), (0, n_pad - N)))
        emb_in = jnp.pad(emb_in, ((0, n_pad - N), (0, 0)))
    if m_pad != M:
        mask_in = jnp.pad(mask_in, ((0, m_pad - M), (0, 0)))

    grid = (m_pad // tm, n_pad // tn)
    precision = (jax.lax.Precision.HIGHEST
                 if (jnp.dtype(mask.dtype) == jnp.float32
                     and jnp.dtype(emb.dtype) == jnp.float32) else None)
    kernel = functools.partial(avg_readout_kernel, precision=precision)

    out = pl.pallas_call(
        kernel,
        out_shape=jax.ShapeDtypeStruct((m_pad, D), out_dtype),
        grid_spec=pltpu.PrefetchScalarGridSpec(
            num_scalar_prefetch=0,
            grid=grid,
            in_specs=[
                pl.BlockSpec((tm, tn), lambda i, k: (i, k)),    # mask tile
                pl.BlockSpec((tn, D), lambda i, k: (k, 0)),     # emb tile
            ],
            out_specs=pl.BlockSpec((tm, D), lambda i, k: (i, 0)),
            scratch_shapes=[pltpu.VMEM((tm, D), jnp.float32),   # vsum accumulator
                            pltpu.VMEM((tm, 1), jnp.float32)],  # row-sum accumulator
        ),
        compiler_params=pltpu.CompilerParams(
            dimension_semantics=("parallel", "arbitrary"),
            vmem_limit_bytes=vmem_limit,
        ),
        cost_estimate=pl.CostEstimate(
            flops=2 * m_pad * n_pad * D + m_pad * n_pad,
            transcendentals=2 * m_pad,
            bytes_accessed=(bpe_mask * m_pad * n_pad
                            + bpe_emb * n_pad * D * grid[0]
                            + bpe_out * m_pad * D),
        ),
    )(mask_in, emb_in)
    return out[:M] if m_pad != M else out


def avg_readout_ref(emb, mask):
    vsum = jnp.matmul(mask, emb, precision=jax.lax.Precision.HIGHEST)
    row_sum = jnp.sum(mask, axis=1, keepdims=True)
    g = vsum / row_sum
    norm = jnp.maximum(jnp.linalg.norm(g, axis=1, keepdims=True), 1e-12)
    return g / norm


if __name__ == "__main__":
    key = jax.random.PRNGKey(0)
    k1, k2, k3, k4, k5, k6 = jax.random.split(key, 6)

    # Case 1: small shapes typical of the module; single-tile grid, zero padding.
    M, N, D = 8, 16, 32
    mask = jax.random.uniform(k1, (M, N), dtype=jnp.float32) + 0.1
    emb = jax.random.normal(k2, (N, D), dtype=jnp.float32)
    out = jax.block_until_ready(avg_readout(emb, mask))
    ref = avg_readout_ref(emb, mask)
    assert out.shape == (M, D)
    assert jnp.allclose(out, ref, atol=2e-3, rtol=2e-3), (
        f"case1 max abs err {jnp.max(jnp.abs(out - ref))}")

    # Case 2: forced tiled N reduction (3 k-steps, 384 % 128 == 0 so no padding),
    # M not a multiple of 8 (full-dim block), D not a multiple of 128.
    M2, N2, D2 = 10, 384, 40
    mask2 = jax.random.uniform(k3, (M2, N2), dtype=jnp.float32) + 0.1
    emb2 = jax.random.normal(k4, (N2, D2), dtype=jnp.float32)
    out2 = jax.block_until_ready(avg_readout(emb2, mask2, tn_cap=128))
    ref2 = avg_readout_ref(emb2, mask2)
    assert out2.shape == (M2, D2)
    assert jnp.allclose(out2, ref2, atol=2e-3, rtol=2e-3), (
        f"case2 max abs err {jnp.max(jnp.abs(out2 - ref2))}")

    # Case 3: ragged N (exercises the pad-only-when-tiled fallback path).
    M3, N3, D3 = 6, 200, 24
    mask3 = jax.random.uniform(k5, (M3, N3), dtype=jnp.float32) + 0.1
    emb3 = jax.random.normal(k6, (N3, D3), dtype=jnp.float32)
    out3 = jax.block_until_ready(avg_readout(emb3, mask3, tn_cap=128))
    ref3 = avg_readout_ref(emb3, mask3)
    assert out3.shape == (M3, D3)
    assert jnp.allclose(out3, ref3, atol=2e-3, rtol=2e-3), (
        f"case3 max abs err {jnp.max(jnp.abs(out3 - ref3))}")

    print("KERNEL_OK")
</pallas_src>

<mosaic_0001>
module attributes {stable_mosaic.version = 11 : i64} {
  func.func @avg_readout_kernel(%arg0: i32, %arg1: i32, %arg2: memref<8x16xf32, #tpu.memory_space<vmem>>, %arg3: memref<16x32xf32, #tpu.memory_space<vmem>>, %arg4: memref<8x32xf32, #tpu.memory_space<vmem>>, %arg5: memref<8x32xf32, #tpu.memory_space<vmem>>, %arg6: memref<8x1xf32, #tpu.memory_space<vmem>>) attributes {dimension_semantics = [#tpu.dimension_semantics<parallel>, #tpu.dimension_semantics<arbitrary>], iteration_bounds = array<i64: 1, 1>, scalar_prefetch = 0 : i64, scratch_operands = 2 : i64, tpu.core_type = #tpu.core_type<tc>, window_params = [{transform_indices = @transform_0, window_bounds = array<i64: 8, 16>}, {transform_indices = @transform_1, window_bounds = array<i64: 16, 32>}, {transform_indices = @transform_2, window_bounds = array<i64: 8, 32>}]} {
    %c0_i32 = arith.constant 0 : i32
    %0 = arith.cmpi eq, %arg1, %c0_i32 : i32
    %1 = arith.extui %0 : i1 to i32
    %c0_i32_0 = arith.constant 0 : i32
    %2 = arith.cmpi ne, %1, %c0_i32_0 : i32
    scf.if %2 {
      %cst_15 = arith.constant 0.000000e+00 : f32
      %17 = vector.broadcast %cst_15 : f32 to vector<8x32xf32>
      %c0_16 = arith.constant 0 : index
      %c0_17 = arith.constant 0 : index
      %18 = vector.load %arg5[%c0_16, %c0_17] : memref<8x32xf32, #tpu.memory_space<vmem>>, vector<8x32xf32>
      tpu.vector_store %arg5[%c0_16, %c0_17], %17 {strides = array<i32>} : memref<8x32xf32, #tpu.memory_space<vmem>>, vector<8x32xf32>,
      %cst_18 = arith.constant 0.000000e+00 : f32
      %19 = vector.broadcast %cst_18 : f32 to vector<8x1xf32>
      %c0_19 = arith.constant 0 : index
      %c0_20 = arith.constant 0 : index
      %20 = vector.load %arg6[%c0_19, %c0_20] : memref<8x1xf32, #tpu.memory_space<vmem>>, vector<8x1xf32>
      tpu.vector_store %arg6[%c0_19, %c0_20], %19 {strides = array<i32>} : memref<8x1xf32, #tpu.memory_space<vmem>>, vector<8x1xf32>,
    } else {
    }
    %c0 = arith.constant 0 : index
    %c0_1 = arith.constant 0 : index
    %3 = vector.load %arg2[%c0, %c0_1] : memref<8x16xf32, #tpu.memory_space<vmem>>, vector<8x16xf32>
    %c0_2 = arith.constant 0 : index
    %c0_3 = arith.constant 0 : index
    %4 = vector.load %arg5[%c0_2, %c0_3] : memref<8x32xf32, #tpu.memory_space<vmem>>, vector<8x32xf32>
    %c0_4 = arith.constant 0 : index
    %c0_5 = arith.constant 0 : index
    %5 = vector.load %arg3[%c0_4, %c0_5] : memref<16x32xf32, #tpu.memory_space<vmem>>, vector<16x32xf32>
    %cst = arith.constant dense<0.000000e+00> : vector<8x32xf32>
    %6 = tpu.matmul %3, %5, %cst {dimension_numbers = #tpu.dot_dimension_numbers<[1], [0], [0], [1], [0, 0, 1, 1], [], []>, precision = #tpu.contract_precision<fp32>} : vector<8x16xf32>, vector<16x32xf32>, vector<8x32xf32> -> vector<8x32xf32>
    %7 = arith.addf %4, %6 : vector<8x32xf32>
    %c0_6 = arith.constant 0 : index
    %c0_7 = arith.constant 0 : index
    %8 = vector.load %arg5[%c0_6, %c0_7] : memref<8x32xf32, #tpu.memory_space<vmem>>, vector<8x32xf32>
    tpu.vector_store %arg5[%c0_6, %c0_7], %7 {strides = array<i32>} : memref<8x32xf32, #tpu.memory_space<vmem>>, vector<8x32xf32>,
    %c0_8 = arith.constant 0 : index
    %c0_9 = arith.constant 0 : index
    %9 = vector.load %arg6[%c0_8, %c0_9] : memref<8x1xf32, #tpu.memory_space<vmem>>, vector<8x1xf32>
    %cst_10 = arith.constant dense<0.000000e+00> : vector<8xf32>
    %10 = vector.multi_reduction <add>, %3, %cst_10 [1] : vector<8x16xf32> to vector<8xf32>
    %11 = vector.shape_cast %10 : vector<8xf32> to vector<8x1xf32>
    %12 = arith.addf %9, %11 : vector<8x1xf32>
    %c0_11 = arith.constant 0 : index
    %c0_12 = arith.constant 0 : index
    %13 = vector.load %arg6[%c0_11, %c0_12] : memref<8x1xf32, #tpu.memory_space<vmem>>, vector<8x1xf32>
    tpu.vector_store %arg6[%c0_11, %c0_12], %12 {strides = array<i32>} : memref<8x1xf32, #tpu.memory_space<vmem>>, vector<8x1xf32>,
    %c0_i32_13 = arith.constant 0 : i32
    %14 = arith.cmpi eq, %arg1, %c0_i32_13 : i32
    %15 = arith.extui %14 : i1 to i32
    %c0_i32_14 = arith.constant 0 : i32
    %16 = arith.cmpi ne, %15, %c0_i32_14 : i32
    scf.if %16 {
      %c0_15 = arith.constant 0 : index
      %c0_16 = arith.constant 0 : index
      %17 = vector.load %arg6[%c0_15, %c0_16] : memref<8x1xf32, #tpu.memory_space<vmem>>, vector<8x1xf32>
      %18 = tpu.reciprocal %17 {approx = true} : vector<8x1xf32> -> vector<8x1xf32>
      %c0_17 = arith.constant 0 : index
      %c0_18 = arith.constant 0 : index
      %19 = vector.load %arg5[%c0_17, %c0_18] : memref<8x32xf32, #tpu.memory_space<vmem>>, vector<8x32xf32>
      %20 = vector.broadcast %18 : vector<8x1xf32> to vector<8x32xf32>
      %21 = arith.mulf %19, %20 : vector<8x32xf32>
      %22 = arith.mulf %21, %21 : vector<8x32xf32>
      %cst_19 = arith.constant dense<0.000000e+00> : vector<8xf32>
      %23 = vector.multi_reduction <add>, %22, %cst_19 [1] : vector<8x32xf32> to vector<8xf32>
      %24 = vector.shape_cast %23 : vector<8xf32> to vector<8x1xf32>
      %cst_20 = arith.constant 1.000000e-24 : f32
      %25 = vector.broadcast %cst_20 : f32 to vector<8x1xf32>
      %26 = arith.cmpf ogt, %24, %25 : vector<8x1xf32>
      %27 = math.rsqrt %24 : vector<8x1xf32>
      %cst_21 = arith.constant 9.99999995E+11 : f32
      %28 = vector.broadcast %cst_21 : f32 to vector<8x1xf32>
      %29 = arith.select %26, %27, %28 : vector<8x1xi1>, vector<8x1xf32>
      %30 = vector.broadcast %29 : vector<8x1xf32> to vector<8x32xf32>
      %31 = arith.mulf %21, %30 : vector<8x32xf32>
      %c0_22 = arith.constant 0 : index
      %c0_23 = arith.constant 0 : index
      %32 = vector.load %arg4[%c0_22, %c0_23] : memref<8x32xf32, #tpu.memory_space<vmem>>, vector<8x32xf32>
      tpu.vector_store %arg4[%c0_22, %c0_23], %31 {strides = array<i32>} : memref<8x32xf32, #tpu.memory_space<vmem>>, vector<8x32xf32>,
    } else {
    }
    return
  }
  func.func @transform_0(%arg0: i32, %arg1: i32) -> (i32, i32) {
    %c0_i32 = arith.constant 0 : i32
    return %arg0, %arg1 : i32, i32
  }
  func.func @transform_1(%arg0: i32, %arg1: i32) -> (i32, i32) {
    %c0_i32 = arith.constant 0 : i32
    %c0_i32_0 = arith.constant 0 : i32
    return %arg1, %c0_i32 : i32, i32
  }
  func.func @transform_2(%arg0: i32, %arg1: i32) -> (i32, i32) {
    %c0_i32 = arith.constant 0 : i32
    %c0_i32_0 = arith.constant 0 : i32
    return %arg0, %c0_i32 : i32, i32
  }
}

</mosaic_0001>

<bundles_post_ra>
// kernel: tpu_custom_call.1
= control target key start
LH: loop header
LB: loop body
LE: loop exit
PB: predicated region body
PF: predicated region fallthrough
CT: control target
= control target key end

     0   :  { %7 = vsyncpa [#allocation5], 0  ;;  %s763_s0 = inlined_call_operand.hbm [shape: f32[8,16], index: 0, kind: input, shape index: {}]   ;;  %s764_s1 = inlined_call_operand.hbm [shape: f32[16,32], index: 1, kind: input, shape index: {}]   ;;  %s765_s2 = inlined_call_operand.hbm [shape: f32[8,32], index: 2, kind: output, shape index: {}]  }
   0x1   :  { %8 = vsyncpa [#allocation8], 0 }
   0x2   :  { %9 = vsyncpa [#allocation6], 0  ;;  %s699_s9 = smov [#allocation4]   ;;  %s700_s11 = smov [#allocation7]  }
   0x3   :  { %s16_s10 = sshll.u32 %s699_s9, 4  ;;  %s25_s12 = sshll.u32 %s700_s11, 4  ;;  %s17_s10 = int_to_ptr.vmem [resolvable:$true] %s16_s10  ;;  %s26_s12 = int_to_ptr.vmem [resolvable:$true] %s25_s12 }
   0x4   :  { %s641_s13 = scalar_lea.vmem %s17_s10, 128  ;;  %p646_p1 = scmp.lt.s32.totalorder %s17_s10, %s17_s10 }
   0x5   :  { %p642_p0 = scmp.ne.s32.totalorder %s17_s10, %s641_s13  ;;  %p647_p2 = scmp.lt.s32.totalorder %s641_s13, %s641_s13 }
   0x7   :  { %p648_p3 = por %p647_p2, %p646_p1 }
   0x9   :  { %p649_p4 = pnand %p648_p3, %p642_p0 }
   0xb   :  { %652 = shalt.err (!%p649_p4)
}
   0xc   :  { %19 = dma.hbm_to_vmem [thread:$0]  %s763_s0, 128, %s17_s10, [#allocation5]  }
   0xd   :  { %s661_s16 = scalar_lea.vmem %s26_s12, 256  ;;  %p666_p6 = scmp.lt.s32.totalorder %s26_s12, %s26_s12 }
   0xe   :  { %p662_p5 = scmp.ne.s32.totalorder %s26_s12, %s661_s16  ;;  %p667_p7 = scmp.lt.s32.totalorder %s661_s16, %s661_s16 }
  0x10   :  { %p668_p8 = por %p667_p7, %p666_p6 }
  0x12   :  { %p669_p9 = pnand %p668_p8, %p662_p5 }
  0x14   :  { %672 = shalt.err (!%p669_p9)
}
  0x15   :  { %s701_s17 = smov 128   ;;  %s702_s18 = smov 8  }
  0x16   :  { %31 = dma.hbm_to_vmem [thread:$0]  %s764_s1, 256, %s26_s12, [#allocation8], %s701_s17, %s701_s17, %s702_s18  }
  0x17   :  { %693 = dma.done.wait [#allocation5], 128  }
  0x18   :  { %694 = vsyncadd [#allocation5], 4294967168 }
  0x19   :  { %695 = dma.done.wait [#allocation8], 256  }
  0x1a   :  { %696 = vsyncadd [#allocation8], 4294967040  ;;  %vm44_vm0 = vcmask 7168   ;;  %v703_v0 = vmov 0.0   ;;  %vm704_vm1 = vmmov 0   ;;  %vm50_vm2 = vcmask 130048  }
  0x1b   :  { %578 = vmatprep.subr.mxu0 %v703_v0  ;;  %585 = vmatprep.subr.mxu1 %v703_v0  ;;  %45 = vst.msk [vmem:[#allocation3] sm:$0xff] %vm44_vm0, %v703_v0  ;;  %v46_v1 = vld [vmem:[#allocation4] sm:$0xff]  ;;  %v49_v2 = vld [vmem:[#allocation7 + $0x8] sm:$0xff]  ;;  %v48_v3 = vld [vmem:[#allocation7] sm:$0xff]  ;;  %v705_v21 = vmov 0   ;;  %vm42_vm3 = vcmask 261120  }
  0x1c   :  { %582 = vmatprep.mubr.msk.f32.mxu0 %vm704_vm1, %v703_v0  ;;  %589 = vmatprep.mubr.msk.f32.mxu1 %vm704_vm1, %v703_v0  ;;  %v517_v4 = vsel %vm50_vm2, %v46_v1, 0.0  ;;  %v52_v5 = vsel %vm50_vm2, %v46_v1, 0  ;;  %v83_v6 = vand.u32 4294901760, %v49_v2  ;;  %v86_v7 = vand.u32 4294901760, %v48_v3  ;;  %43 = vst.msk [vmem:[#allocation2] sm:$0xff] %vm42_vm3, %v703_v0  ;;  %s706_s0 = smov [#allocation9]  }
  0x1d   :  { %518 = vadd.xlane.f32.xlu0 %v517_v4  ;;  %v121_v8 = vand.u32 4294901760, %v52_v5  ;;  %s550_s1 = sshll.u32 %s706_s0, 4  ;;  %s551_s1 = int_to_ptr.vmem [resolvable:$true] %s550_s1 }
  0x1e   :  { %579 = vmatpush3.msra.mxu0 %v83_v6  ;;  %v161_v9 = vsub.f32 %v49_v2, %v83_v6  ;;  %v168_v10 = vsub.f32 %v48_v3, %v86_v7  ;;  %628 = vset.pattern.permute.xlu0 %v705_v21  ;;  %s673_s21 = scalar_lea.vmem %s551_s1, 128  ;;  %p678_p11 = scmp.lt.s32.totalorder %s551_s1, %s551_s1 }
  0x1f   :  { %v122_v11 = vsub.f32 %v52_v5, %v121_v8  ;;  %580 = vmatprep.subr.mxu0 %v703_v0  ;;  %p674_p10 = scmp.ne.s32.totalorder %s551_s1, %s673_s21  ;;  %p679_p12 = scmp.lt.s32.totalorder %s673_s21, %s673_s21 }
  0x20   :  { %581 = vmatpush3.msra.mxu0 %v86_v7  ;;  %v162_v12 = vand.u32 4294901760, %v161_v9  ;;  %v169_v13 = vand.u32 4294901760, %v168_v10 }
  0x21   :  { %v123_v14 = vand.u32 4294901760, %v122_v11  ;;  %592 = vmatprep.subr.mxu0 %v703_v0  ;;  %p680_p13 = por %p679_p12, %p678_p11 }
  0x22   :  { %v163_v15 = vsub.f32 %v161_v9, %v162_v12  ;;  %v170_v16 = vsub.f32 %v168_v10, %v169_v13  ;;  %v516_v22 = vld [vmem:[#allocation3] sm:$0xff] }
  0x23   :  { %v124_v17 = vsub.f32 %v122_v11, %v123_v14  ;;  %v47_v41 = vld [vmem:[#allocation2] sm:$0xff]  ;;  %p681_p0 = pnand %p680_p13, %p674_p10 }
  0x24   :  { %v164_v18 = vand.u32 4294901760, %v163_v15  ;;  %v171_v19 = vand.u32 4294901760, %v170_v16 }
  0x25   :  { %v125_v20 = vand.u32 4294901760, %v124_v17 }
  0x26   :  { %586 = vmatpush3.msra.mxu1 %v164_v18 }
  0x27   :  { %583 = vmatmul.mubr.f32.vlgmr.msra.gmra.mxu0 %v125_v20  ;;  %587 = vmatprep.subr.mxu1 %v703_v0 }
  0x28   :  { %588 = vmatpush3.msra.mxu1 %v171_v19  ;;  %593 = vmatpush3.msra.mxu0 %v161_v9 }
  0x29   :  { %590 = vmatmul.mubr.f32.vlgmr.msra.gmra.mxu1 %v121_v8  ;;  %594 = vmatprep.subr.mxu0 %v703_v0 }
  0x2a   :  { %599 = vmatprep.subr.mxu1 %v703_v0  ;;  %595 = vmatpush3.msra.mxu0 %v168_v10 }
  0x2b   :  { %596 = vmatprep.mubr.msk.f32.mxu0 %vm704_vm1, %v703_v0  ;;  %600 = vmatpush3.msra.mxu1 %v83_v6 }
  0x2c   :  { %597 = vmatmul.mubr.f32.vlgmr.msra.gmra.mxu0 %v122_v11  ;;  %601 = vmatprep.subr.mxu1 %v703_v0 }
  0x2d   :  { %606 = vmatprep.subr.mxu0 %v703_v0  ;;  %602 = vmatpush3.msra.mxu1 %v86_v7 }
  0x2e   :  { %603 = vmatprep.mubr.msk.f32.mxu1 %vm704_vm1, %v703_v0  ;;  %607 = vmatpush3.msra.mxu0 %v162_v12 }
  0x2f   :  { %604 = vmatmul.mubr.f32.vlgmr.msra.gmra.mxu1 %v123_v14  ;;  %608 = vmatprep.subr.mxu0 %v703_v0 }
  0x30   :  { %613 = vmatprep.subr.mxu1 %v703_v0  ;;  %609 = vmatpush3.msra.mxu0 %v169_v13 }
  0x31   :  { %610 = vmatprep.mubr.msk.f32.mxu0 %vm704_vm1, %v703_v0  ;;  %614 = vmatpush3.msra.mxu1 %v83_v6 }
  0x32   :  { %611 = vmatmul.mubr.f32.vlgmr.msra.gmra.mxu0 %v121_v8  ;;  %615 = vmatprep.subr.mxu1 %v703_v0 }
  0x33   :  { %616 = vmatpush3.msra.mxu1 %v86_v7  ;;  %617 = vmatprep.mubr.msk.f32.mxu1 %vm704_vm1, %v703_v0 }
  0x34   :  { %618 = vmatmul.mubr.f32.vlgmr.msra.gmra.mxu1 %v121_v8 }
  0xa6   :  { %v519_v23 = vpop.xlane.xlu0 %518 }
  0xa7   :  { %v520_v24 = vadd.f32 %v519_v23, %v516_v22 }
  0xa9   :  { %522 = vst.msk [vmem:[#allocation3] sm:$0xff] %vm44_vm0, %v520_v24 }
  0xb0   :  { %v526_v25 = vld [vmem:[#allocation3] sm:$0xff] }
  0xb1   :  { %629 = vrcp.f32 %v526_v25 }
  0xbe   :  { %v630_v26 = vpop.eup %629 }
  0xbf   :  { %531 = vperm.xlu0 %628, %v630_v26  }
  0xe7   :  { %v127_v27 = vpop.f32.mrf.mxu0 }
  0xe9   :  { %v584_v28 = vpop.f32.mrf.mxu0  ;;  %v208_v29 = vpop.f32.mrf.mxu1 }
  0xea   :  { %v209_v30 = vadd.f32 %v208_v29, %v127_v27 }
  0xeb   :  { %v591_v31 = vpop.f32.mrf.mxu1 }
  0xec   :  { %v284_v32 = vpop.f32.mrf.mxu0 }
  0xed   :  { %v285_v33 = vadd.f32 %v284_v32, %v209_v30 }
  0xee   :  { %v598_v34 = vpop.f32.mrf.mxu0 }
  0xef   :  { %v359_v35 = vpop.f32.mrf.mxu1 }
  0xf0   :  { %v360_v36 = vadd.f32 %v359_v35, %v285_v33 }
  0xf1   :  { %v605_v37 = vpop.f32.mrf.mxu1 }
  0xf2   :  { %v436_v38 = vpop.f32.mrf.mxu0 }
  0xf3   :  { %v437_v39 = vadd.f32 %v436_v38, %v360_v36 }
  0xf4   :  { %v612_v40 = vpop.f32.mrf.mxu0  ;;  %v509_v42 = vpop.f32.mrf.mxu1 }
  0xf5   :  { %v510_v43 = vadd.f32 %v509_v42, %v437_v39 }
  0xf6   :  { %v619_v44 = vpop.f32.mrf.mxu1 }
  0xf7   :  { %v513_v45 = vadd.f32 %v510_v43, %v47_v41 }
  0xf9   :  { %515 = vst.msk [vmem:[#allocation2] sm:$0xff] %vm42_vm3, %v513_v45 }
 0x100   :  { %v528_v47 = vld [vmem:[#allocation2] sm:$0xff] }
 0x13a   :  { %v532_v46 = vpop.permute.xlu0 %531 }
 0x13b   :  { %v534_v48 = vmul.f32 %v532_v46, %v528_v47 }
 0x13d   :  { %v535_v49 = vmul.f32 %v534_v48, %v534_v48 }
 0x13f   :  { %v536_v50 = vsel %vm42_vm3, %v535_v49, 0.0 }
 0x140   :  { %537 = vadd.xlane.f32.xlu1 %v536_v50 }
 0x1c9   :  { %v538_v51 = vpop.xlane.xlu1 %537 }
 0x1ca   :  { %631 = vrsqrt.f32 %v538_v51  ;;  %vm539_vm4 = vcmp.gt.f32.partialorder %v538_v51, 1e-24 }
 0x1d7   :  { %v632_v52 = vpop.eup %631 }
 0x1d8   :  { %v541_v53 = vsel %vm539_vm4, %v632_v52, 1e+12 }
 0x1d9   :  { %v542_v54 = vmul.f32 %v541_v53, %v534_v48 }
 0x1db   :  { %543 = vst.msk [vmem:[#allocation9] sm:$0xff] %vm42_vm3, %v542_v54 }
 0x1dc   :  { %684 = shalt.err (!%p681_p0)
}
 0x1dd   :  { %553 = dma.vmem_to_hbm [thread:$0]  %s551_s1, 128, %s765_s2, [#allocation6]  }
 0x1de   :  { %697 = dma.done.wait [#allocation6], 128  }
 0x1df   :  { %698 = vsyncadd [#allocation6], 4294967168 }
 0x1e0   :  { %557 = vsyncpa [#allocation5], 1 }
 0x1e1   :  { %558 = vsyncpa [#allocation8], 1 }
 0x1e2   :  { %559 = vsyncpa [#allocation6], 1 }

</bundles_post_ra>
